<compile_context>
chip_gen: v7x
topology: tpu7x:2x2x1
jax: 0.10.0
libtpu: 0.0.40
codegen_flags: <defaults>
</compile_context>

<pallas_src>
import functools
import math

import jax
import jax.numpy as jnp
from jax import lax
from jax.experimental import pallas as pl
from jax.experimental.pallas import tpu as pltpu

# Explicit scoped-VMEM budget: >= v5e's 16 MiB default, == v6e/v7x default,
# comfortably below v7x's 64 MiB physical VMEM.
_VMEM_LIMIT_BYTES = 32 * 1024 * 1024


def _pick_tile(total, target, quantum):
    """Largest tile <= target dividing `total` that is a multiple of `quantum`
    (falls back to the full extent, which is always legal for a BlockSpec)."""
    if total <= target:
        return total
    for t in range(target, 0, -1):
        if total % t == 0 and t % quantum == 0:
            return t
    return total


# ---------------------------------------------------------------------------
# Kernel 1: fused QKV projection   qkv = x @ [Wq|Wk|Wv] + [bq|bk|bv]
# ---------------------------------------------------------------------------
def _qkv_proj_kernel(x_ref, w_ref, b_ref, qkv_ref):
    # x_ref: (TM, D) bf16 | w_ref: (D, 3D) bf16 (resident) | b_ref: (1, 3D) f32
    acc = jnp.dot(x_ref[...], w_ref[...], preferred_element_type=jnp.float32)
    qkv_ref[...] = (acc + b_ref[...]).astype(qkv_ref.dtype)


def _qkv_projection(x2d, w_qkv, b_qkv, *, tile_m):
    bs, d = x2d.shape
    d3 = w_qkv.shape[1]
    return pl.pallas_call(
        _qkv_proj_kernel,
        out_shape=jax.ShapeDtypeStruct((bs, d3), jnp.bfloat16),
        grid_spec=pltpu.PrefetchScalarGridSpec(
            num_scalar_prefetch=0,
            grid=(bs // tile_m,),
            in_specs=[
                pl.BlockSpec((tile_m, d), lambda i: (i, 0)),   # x rows
                pl.BlockSpec((d, d3), lambda i: (0, 0)),       # fused weight (resident)
                pl.BlockSpec((1, d3), lambda i: (0, 0)),       # fused bias (resident)
            ],
            out_specs=pl.BlockSpec((tile_m, d3), lambda i: (i, 0)),
        ),
        compiler_params=pltpu.CompilerParams(
            dimension_semantics=("parallel",),
            vmem_limit_bytes=_VMEM_LIMIT_BYTES,
        ),
    )(x2d, w_qkv, b_qkv)


# ---------------------------------------------------------------------------
# Kernel 2: flash-style attention over head-major q/k/v (B, H, S, W)
# ---------------------------------------------------------------------------
def _flash_attn_kernel(q_ref, k_ref, v_ref, mask_ref, o_ref,
                       m_sc, l_sc, acc_sc, *, scale):
    ki = pl.program_id(3)

    @pl.when(ki == 0)
    def _init():
        m_sc[...] = jnp.full_like(m_sc[...], -jnp.inf)
        l_sc[...] = jnp.zeros_like(l_sc[...])
        acc_sc[...] = jnp.zeros_like(acc_sc[...])

    q = q_ref[...]                                   # (TQ, W) bf16
    k = k_ref[...]                                   # (TK, W) bf16
    v = v_ref[...]                                   # (TK, W) bf16

    # scores = q @ k^T (contract head width) -> (TQ, TK), f32 accumulation.
    s = lax.dot_general(q, k, (((1,), (1,)), ((), ())),
                        preferred_element_type=jnp.float32) * scale
    s = s - 10000.0 * (1.0 - mask_ref[...])          # (1, TK) broadcast over rows

    m_prev = m_sc[...]
    m_new = jnp.maximum(m_prev, jnp.max(s, axis=-1, keepdims=True))
    alpha = jnp.exp(m_prev - m_new)
    p = jnp.exp(s - m_new)

    l_sc[...] = alpha * l_sc[...] + jnp.sum(p, axis=-1, keepdims=True)
    acc_sc[...] = alpha * acc_sc[...] + jnp.dot(
        p.astype(v.dtype), v, preferred_element_type=jnp.float32)
    m_sc[...] = m_new

    @pl.when(ki == pl.num_programs(3) - 1)
    def _finish():
        inv_l = pl.reciprocal(l_sc[...], approx=True)     # EUP slot, ~free
        o_ref[...] = (acc_sc[...] * inv_l).astype(o_ref.dtype)


def _flash_attention(q, k, v, mask3, *, scale, tile_q, tile_k, out_dtype):
    b, h, s, w = q.shape
    grid = (b, h, s // tile_q, s // tile_k)
    kernel = functools.partial(_flash_attn_kernel, scale=scale)
    return pl.pallas_call(
        kernel,
        out_shape=jax.ShapeDtypeStruct((b, h, s, w), out_dtype),
        grid_spec=pltpu.PrefetchScalarGridSpec(
            num_scalar_prefetch=0,
            grid=grid,
            in_specs=[
                pl.BlockSpec((None, None, tile_q, w),
                             lambda bi, hi, qi, ki: (bi, hi, qi, 0)),   # q
                pl.BlockSpec((None, None, tile_k, w),
                             lambda bi, hi, qi, ki: (bi, hi, ki, 0)),   # k
                pl.BlockSpec((None, None, tile_k, w),
                             lambda bi, hi, qi, ki: (bi, hi, ki, 0)),   # v
                pl.BlockSpec((None, 1, tile_k),
                             lambda bi, hi, qi, ki: (bi, 0, ki)),       # mask
            ],
            out_specs=pl.BlockSpec((None, None, tile_q, w),
                                   lambda bi, hi, qi, ki: (bi, hi, qi, 0)),
            scratch_shapes=[
                pltpu.VMEM((tile_q, 1), jnp.float32),   # running max m
                pltpu.VMEM((tile_q, 1), jnp.float32),   # running sum l
                pltpu.VMEM((tile_q, w), jnp.float32),   # output accumulator
            ],
        ),
        compiler_params=pltpu.CompilerParams(
            dimension_semantics=("parallel", "parallel", "parallel", "arbitrary"),
            vmem_limit_bytes=_VMEM_LIMIT_BYTES,
        ),
    )(q, k, v, mask3)


# ---------------------------------------------------------------------------
# Public wrapper
# ---------------------------------------------------------------------------
def multi_headed_self_attention(x, wq, bq, wk, bk, wv, bv, mask, *, n_heads):
    """x: (B, S, D); wq/wk/wv: (D, D) applied as x @ W + b (nn.Linear weight
    transposed); bq/bk/bv: (D,); mask: (B, S) with 1 = attend, 0 = masked."""
    B, S, D = x.shape
    assert D % n_heads == 0
    W = D // n_heads
    scale = 1.0 / math.sqrt(W)

    # Fused (D, 3D) weight / (1, 3D) bias: one MXU pass instead of three.
    w_qkv = jnp.concatenate([wq, wk, wv], axis=1).astype(jnp.bfloat16)
    b_qkv = jnp.concatenate([bq, bk, bv]).reshape(1, 3 * D).astype(jnp.float32)

    x_bf16 = x.astype(jnp.bfloat16).reshape(B * S, D)
    tile_m = _pick_tile(B * S, 256, 8)

    qkv = _qkv_projection(x_bf16, w_qkv, b_qkv, tile_m=tile_m)   # (B*S, 3D) bf16

    # Head-major relayout (XLA) so the attention kernel sees (B, H, S, W) and
    # never slices lanes at non-128-aligned per-head offsets.
    qkv = qkv.reshape(B, S, 3, n_heads, W)
    q = qkv[:, :, 0].transpose(0, 2, 1, 3)   # (B, H, S, W)
    k = qkv[:, :, 1].transpose(0, 2, 1, 3)
    v = qkv[:, :, 2].transpose(0, 2, 1, 3)

    mask3 = mask.reshape(B, 1, S).astype(jnp.float32)

    tile_q = _pick_tile(S, 256, 8)     # q-row tile (multiple of 8 or full)
    tile_k = _pick_tile(S, 512, 128)   # kv tile (also last dim of mask block)

    out_h = _flash_attention(q, k, v, mask3, scale=scale, tile_q=tile_q,
                             tile_k=tile_k, out_dtype=x.dtype)   # (B, H, S, W)

    return out_h.transpose(0, 2, 1, 3).reshape(B, S, D)


# ---------------------------------------------------------------------------
# Reference + test harness
# ---------------------------------------------------------------------------
def _reference(x, wq, bq, wk, bk, wv, bv, mask, n_heads):
    # Plain-JAX mirror of the PyTorch forward (dropout = identity).
    B, S, D = x.shape
    W = D // n_heads
    with jax.default_matmul_precision("float32"):
        q = x @ wq + bq
        k = x @ wk + bk
        v = x @ wv + bv

        def split(t):
            return t.reshape(B, S, n_heads, W).transpose(0, 2, 1, 3)  # (B,H,S,W)

        q, k, v = split(q), split(k), split(v)
        scores = (q @ jnp.swapaxes(k, -1, -2)) / jnp.sqrt(jnp.float32(W))
        m = mask[:, None, None, :].astype(jnp.float32)
        scores = scores - 10000.0 * (1.0 - m)
        p = jax.nn.softmax(scores, axis=-1)
        h = (p @ v).transpose(0, 2, 1, 3).reshape(B, S, D)
    return h


if __name__ == "__main__":
    batch, seq, hidden, n_heads = 2, 8, 32, 4

    key = jax.random.PRNGKey(0)
    kx, k0, k1, k2, k3, k4, k5 = jax.random.split(key, 7)
    x = jax.random.normal(kx, (batch, seq, hidden), dtype=jnp.float32)

    wscale = 1.0 / math.sqrt(hidden)
    wq = jax.random.normal(k0, (hidden, hidden), dtype=jnp.float32) * wscale
    wk = jax.random.normal(k1, (hidden, hidden), dtype=jnp.float32) * wscale
    wv = jax.random.normal(k2, (hidden, hidden), dtype=jnp.float32) * wscale
    bq = jax.random.normal(k3, (hidden,), dtype=jnp.float32) * 0.1
    bk = jax.random.normal(k4, (hidden,), dtype=jnp.float32) * 0.1
    bv = jax.random.normal(k5, (hidden,), dtype=jnp.float32) * 0.1

    # mask: 1 = attend, 0 = padded; batch 1 has two padded tail positions.
    mask = jnp.ones((batch, seq), dtype=jnp.float32).at[1, 6:].set(0.0)

    out = multi_headed_self_attention(x, wq, bq, wk, bk, wv, bv, mask,
                                      n_heads=n_heads)
    jax.block_until_ready(out)

    ref = _reference(x, wq, bq, wk, bk, wv, bv, mask, n_heads)
    assert out.shape == (batch, seq, hidden)
    max_err = float(jnp.max(jnp.abs(out - ref)))
    # bf16 MXU inputs + approx reciprocal -> loosened tolerance vs f32 reference.
    assert jnp.allclose(out, ref, atol=5e-2, rtol=5e-2), max_err
    print("KERNEL_OK")
</pallas_src>

<mosaic_0001>
module attributes {stable_mosaic.version = 11 : i64} {
  func.func @_qkv_proj_kernel(%arg0: i32, %arg1: memref<16x32xbf16, #tpu.memory_space<vmem>>, %arg2: memref<32x96xbf16, #tpu.memory_space<vmem>>, %arg3: memref<1x96xf32, #tpu.memory_space<vmem>>, %arg4: memref<16x96xbf16, #tpu.memory_space<vmem>>) attributes {dimension_semantics = [#tpu.dimension_semantics<parallel>], iteration_bounds = array<i64: 1>, scalar_prefetch = 0 : i64, scratch_operands = 0 : i64, tpu.core_type = #tpu.core_type<tc>, window_params = [{transform_indices = @transform_0, window_bounds = array<i64: 16, 32>}, {pipeline_mode = #tpu.pipeline_mode<synchronous>, transform_indices = @transform_1, window_bounds = array<i64: 32, 96>}, {pipeline_mode = #tpu.pipeline_mode<synchronous>, transform_indices = @transform_2, window_bounds = array<i64: 1, 96>}, {transform_indices = @transform_3, window_bounds = array<i64: 16, 96>}]} {
    %c0 = arith.constant 0 : index
    %c0_0 = arith.constant 0 : index
    %0 = vector.load %arg1[%c0, %c0_0] : memref<16x32xbf16, #tpu.memory_space<vmem>>, vector<16x32xbf16>
    %c0_1 = arith.constant 0 : index
    %c0_2 = arith.constant 0 : index
    %1 = vector.load %arg2[%c0_1, %c0_2] : memref<32x96xbf16, #tpu.memory_space<vmem>>, vector<32x96xbf16>
    %cst = arith.constant dense<0.000000e+00> : vector<16x96xf32>
    %2 = tpu.matmul %0, %1, %cst {dimension_numbers = #tpu.dot_dimension_numbers<[1], [0], [0], [1], [0, 0, 1, 1], [], []>} : vector<16x32xbf16>, vector<32x96xbf16>, vector<16x96xf32> -> vector<16x96xf32>
    %c0_3 = arith.constant 0 : index
    %c0_4 = arith.constant 0 : index
    %3 = vector.load %arg3[%c0_3, %c0_4] : memref<1x96xf32, #tpu.memory_space<vmem>>, vector<1x96xf32>
    %4 = vector.broadcast %3 : vector<1x96xf32> to vector<16x96xf32>
    %5 = arith.addf %2, %4 : vector<16x96xf32>
    %6 = arith.truncf %5 : vector<16x96xf32> to vector<16x96xbf16>
    %c0_5 = arith.constant 0 : index
    %c0_6 = arith.constant 0 : index
    %7 = vector.load %arg4[%c0_5, %c0_6] : memref<16x96xbf16, #tpu.memory_space<vmem>>, vector<16x96xbf16>
    tpu.vector_store %arg4[%c0_5, %c0_6], %6 {strides = array<i32>} : memref<16x96xbf16, #tpu.memory_space<vmem>>, vector<16x96xbf16>,
    return
  }
  func.func @transform_0(%arg0: i32) -> (i32, i32) {
    %c0_i32 = arith.constant 0 : i32
    %c0_i32_0 = arith.constant 0 : i32
    return %arg0, %c0_i32 : i32, i32
  }
  func.func @transform_1(%arg0: i32) -> (i32, i32) {
    %c0_i32 = arith.constant 0 : i32
    %c0_i32_0 = arith.constant 0 : i32
    %c0_i32_1 = arith.constant 0 : i32
    return %c0_i32, %c0_i32_0 : i32, i32
  }
  func.func @transform_2(%arg0: i32) -> (i32, i32) {
    %c0_i32 = arith.constant 0 : i32
    %c0_i32_0 = arith.constant 0 : i32
    %c0_i32_1 = arith.constant 0 : i32
    return %c0_i32, %c0_i32_0 : i32, i32
  }
  func.func @transform_3(%arg0: i32) -> (i32, i32) {
    %c0_i32 = arith.constant 0 : i32
    %c0_i32_0 = arith.constant 0 : i32
    return %arg0, %c0_i32 : i32, i32
  }
}

</mosaic_0001>

<bundles_post_ra>
// kernel: tpu_custom_call.1
= control target key start
LH: loop header
LB: loop body
LE: loop exit
PB: predicated region body
PF: predicated region fallthrough
CT: control target
= control target key end

     0   :  { %8 = vsyncpa [#allocation3], 0  ;;  %s325_s0 = inlined_call_operand.hbm [shape: bf16[16,32], index: 0, kind: input, shape index: {}]   ;;  %s326_s1 = inlined_call_operand.hbm [shape: bf16[32,96], index: 1, kind: input, shape index: {}]   ;;  %s327_s2 = inlined_call_operand.vmem [shape: f32[1,96], index: 2, kind: input, shape index: {}]   ;;  %s328_s3 = inlined_call_operand.hbm [shape: bf16[16,96], index: 3, kind: output, shape index: {}]  }
   0x1   :  { %9 = vsyncpa [#allocation6], 0 }
   0x2   :  { %10 = vsyncpa [#allocation4], 0  ;;  %s250_s12 = smov [#allocation2]   ;;  %s178_s16 = scalar_lea.hbm %s325_s0, 128 }
   0x3   :  { %s16_s13 = sshll.u32 %s250_s12, 4  ;;  %p179_p0 = scmp.ne.s32.totalorder %s325_s0, %s178_s16  ;;  %s17_s13 = int_to_ptr.vmem [resolvable:$true] %s16_s13 }
   0x4   :  { %p182_p1 = scmp.lt.u32.totalorder %s178_s16, %s325_s0 }
   0x6   :  { %p184_p2 = pnand %p182_p1, %p179_p0 }
   0x8   :  { %187 = shalt.err (!%p184_p2)
}
   0x9   :  { %s188_s21 = scalar_lea.vmem %s17_s13, 128  ;;  %p193_p4 = scmp.lt.s32.totalorder %s17_s13, %s17_s13 }
   0xa   :  { %p189_p3 = scmp.ne.s32.totalorder %s17_s13, %s188_s21  ;;  %p194_p5 = scmp.lt.s32.totalorder %s188_s21, %s188_s21 }
   0xc   :  { %p195_p6 = por %p194_p5, %p193_p4 }
   0xe   :  { %p196_p7 = pnand %p195_p6, %p189_p3 }
  0x10   :  { %199 = shalt.err (!%p196_p7)
}
  0x11   :  { %s251_s22 = smov 64   ;;  %s252_s23 = smov 4  }
  0x12   :  { %22 = dma.hbm_to_vmem [thread:$0]  %s325_s0, 128, %s17_s13, [#allocation3], %s251_s22, %s251_s22, %s252_s23  }
  0x13   :  { %s253_s26 = smov [#allocation5]   ;;  %s200_s30 = scalar_lea.hbm %s326_s1, 256 }
  0x14   :  { %s28_s27 = sshll.u32 %s253_s26, 4  ;;  %p201_p8 = scmp.ne.s32.totalorder %s326_s1, %s200_s30  ;;  %s29_s27 = int_to_ptr.vmem [resolvable:$true] %s28_s27 }
  0x15   :  { %p204_p9 = scmp.lt.u32.totalorder %s200_s30, %s326_s1 }
  0x17   :  { %p206_p10 = pnand %p204_p9, %p201_p8 }
  0x19   :  { %209 = shalt.err (!%p206_p10)
}
  0x1a   :  { %s210_s8 = scalar_lea.vmem %s29_s27, 256  ;;  %p215_p12 = scmp.lt.s32.totalorder %s29_s27, %s29_s27 }
  0x1b   :  { %p211_p11 = scmp.ne.s32.totalorder %s29_s27, %s210_s8  ;;  %p216_p13 = scmp.lt.s32.totalorder %s210_s8, %s210_s8 }
  0x1d   :  { %p217_p0 = por %p216_p13, %p215_p12 }
  0x1f   :  { %p218_p1 = pnand %p217_p0, %p211_p11 }
  0x21   :  { %221 = shalt.err (!%p218_p1)
}
  0x22   :  { %34 = dma.hbm_to_vmem [thread:$0]  %s326_s1, 256, %s29_s27, [#allocation6], %s251_s22, %s251_s22, %s252_s23  }
  0x23   :  { %244 = dma.done.wait [#allocation3], 128  }
  0x24   :  { %245 = vsyncadd [#allocation3], 4294967168 }
  0x25   :  { %246 = dma.done.wait [#allocation6], 256  }
  0x26   :  { %247 = vsyncadd [#allocation6], 4294967040  ;;  %v254_v0 = vmov 0.0   ;;  %vm255_vm0 = vmmov 0   ;;  %v175_v1 = vld [vmem:[#allocation5] sm:$0xff]   ;;  %v176_v2 = vld [vmem:[#allocation5 + $0x8] sm:$0xff]  }
  0x27   :  { %160 = vmatprep.subr.bf16.mxu0 %v254_v0  ;;  %164 = vmatprep.mubr.msk.bf16.mxu0 %vm255_vm0, %v254_v0  ;;  %v177_v3 = vld [vmem:[#allocation2] sm:$0xff]   ;;  %vm74_vm1 = vcmask 261120   ;;  %vm127_vm2 = vcmask 781312   ;;  %s256_s1 = smov [#allocation7]  }
  0x28   :  { %161 = vmatpush3.bf16.msra.mxu0 %v175_v1  ;;  %v148_v4 = vld [vmem:[%s327_s2] ss:$0 sm:$0xff]  ;;  %s135_s12 = sshll.u32 %s256_s1, 4  ;;  %s136_s12 = int_to_ptr.vmem [resolvable:$true] %s135_s12 }
  0x29   :  { %162 = vmatprep.subr.bf16.mxu0 %v254_v0  ;;  %s222_s13 = scalar_lea.vmem %s136_s12, 128  ;;  %p227_p3 = scmp.lt.s32.totalorder %s136_s12, %s136_s12 }
  0x2a   :  { %p223_p2 = scmp.ne.s32.totalorder %s136_s12, %s222_s13  ;;  %p228_p4 = scmp.lt.s32.totalorder %s222_s13, %s222_s13 }
  0x2c   :  { %163 = vmatpush3.bf16.msra.mxu0 %v176_v2  ;;  %p229_p5 = por %p228_p4, %p227_p3 }
  0x2e   :  { %p230_p6 = pnand %p229_p5, %p223_p2 }
  0x2f   :  { %165 = vmatmul.mubr.msk.bf16.vlgmr.msra.gmra.mrb[0].mxu0 %vm74_vm1, %v177_v3 }
 0x102   :  { %v112_v5 = vpop.f32.mrb[0].mxu0 }
 0x103   :  { %v113_v6 = vadd.f32 %v148_v4, %v112_v5  ;;  %v166_v7 = vpop.f32.mrb[1].mxu0 }
 0x104   :  { %v115_v8 = vpop.f32.mrb[2].mxu0 }
 0x105   :  { %v155_v9 = vpack.c.bf16 %v113_v6, %v113_v6  ;;  %v116_v10 = vadd.f32 %v148_v4, %v115_v8  ;;  %v167_v11 = vpop.f32.mrb[3].mxu0 }
 0x107   :  { %v156_v12 = vpack.c.bf16 %v116_v10, %v116_v10  ;;  %128 = vst.msk [vmem:[#allocation7] sm:$0xf] %vm127_vm2, %v155_v9 }
 0x109   :  { %129 = vst.msk [vmem:[#allocation7 + $0x4] sm:$0xf] %vm127_vm2, %v156_v12 }
 0x10a   :  { %233 = shalt.err (!%p230_p6)
}
 0x10b   :  { %s234_s15 = scalar_lea.hbm %s328_s3, 128 }
 0x10c   :  { %p235_p7 = scmp.ne.s32.totalorder %s328_s3, %s234_s15  ;;  %p238_p8 = scmp.lt.u32.totalorder %s234_s15, %s328_s3 }
 0x10e   :  { %p240_p9 = pnand %p238_p8, %p235_p7 }
 0x110   :  { %243 = shalt.err (!%p240_p9)
}
 0x111   :  { %141 = dma.vmem_to_hbm [thread:$0]  %s136_s12, 128, %s328_s3, [#allocation4], %s251_s22, %s251_s22, %s252_s23  }
 0x112   :  { %248 = dma.done.wait [#allocation4], 128  }
 0x113   :  { %249 = vsyncadd [#allocation4], 4294967168 }
 0x114   :  { %145 = vsyncpa [#allocation3], 1 }
 0x115   :  { %146 = vsyncpa [#allocation6], 1 }
 0x116   :  { %147 = vsyncpa [#allocation4], 1 }

</bundles_post_ra>
